<compile_context>
chip_gen: v7x
topology: tpu7x:2x2x1
jax: 0.10.0
libtpu: 0.0.40
codegen_flags: <defaults>
</compile_context>

<pallas_src>
import math

import jax
import jax.numpy as jnp
from jax.experimental import pallas as pl
from jax.experimental.pallas import tpu as pltpu


def attention_head_kernel(x_ref, wqkv_ref, bqkv_ref, out_ref, probs_ref,
                          q_scr, k_scr, v_scr):
    # Shapes (batch dim squeezed out by the BlockSpecs):
    #   x_ref:     (S, H)      full sequence for this batch element
    #   wqkv_ref:  (H, 3A)     fused [Wq | Wk | Wv]
    #   bqkv_ref:  (1, 3A)     fused bias (f32)
    #   out_ref:   (TQ, A)     output tile for this query block
    #   probs_ref: (TQ, S)     attention-prob tile for this query block
    #   q/k/v_scr: (S, A)      VMEM scratch holding the projections
    qi = pl.program_id(1)
    TQ, A = out_ref.shape

    # --- Fused QKV projection: ONE matmul per batch element -----------------
    # Query-tile axis is "arbitrary", so these scratches persist across all
    # query tiles of the current batch element; the lane-offset split of the
    # (S, 3A) slab is paid once per batch element, not once per tile.
    @pl.when(qi == 0)
    def _():
        qkv = jnp.dot(x_ref[...], wqkv_ref[...],
                      preferred_element_type=jnp.float32) + bqkv_ref[...]
        q_scr[...] = qkv[:, :A].astype(q_scr.dtype)
        k_scr[...] = qkv[:, A:2 * A].astype(k_scr.dtype)
        v_scr[...] = qkv[:, 2 * A:].astype(v_scr.dtype)

    k = k_scr[...]                               # (S, A)
    v = v_scr[...]                               # (S, A)

    start = pl.multiple_of(qi * TQ, TQ)
    q = q_scr[pl.ds(start, TQ), :]               # (TQ, A) sublane slice only

    # --- scores = relu(q @ k^T): transpose folded into dot_general ----------
    scores = jax.lax.dot_general(
        q, k,
        dimension_numbers=(((1,), (1,)), ((), ())),
        preferred_element_type=jnp.float32)      # (TQ, S)
    scores = jnp.maximum(scores, 0.0)

    # --- numerically stable softmax along the key dim -----------------------
    # (Rows fully zeroed by the ReLU become uniform 1/S — matches torch.)
    m = jnp.max(scores, axis=-1, keepdims=True)
    e = jnp.exp(scores - m)
    denom = jnp.sum(e, axis=-1, keepdims=True)
    probs = e * pl.reciprocal(denom, approx=True)   # EUP recip, VPU multiply

    # TODO(synk): dropout on attention_probs is identity (inference / p=0);
    # training-mode dropout would use pltpu.prng_seed + pltpu.prng_random_bits.

    out = jnp.dot(probs.astype(v.dtype), v,
                  preferred_element_type=jnp.float32)  # (TQ, A)

    out_ref[...] = out.astype(out_ref.dtype)
    probs_ref[...] = probs.astype(probs_ref.dtype)


def _pick_tq(S):
    """Query-tile size: lane/MXU friendly multiple of 128 when it divides S,
    otherwise the full (small) sequence as a single tile."""
    for cand in (256, 128):
        if S % cand == 0:
            return cand
    return S


def relu_favor_attention_head(x, wq, bq, wk, bk, wv, bv):
    """x: [B, S, H]; w*: [H, A]; b*: [A].

    Returns (out [B, S, A] in x.dtype, probs [B, S, S] in float32).
    Pass bf16 x / weights to get bf16 MXU operands (f32 accumulation).
    """
    B, S, H = x.shape
    A = wq.shape[1]
    TQ = _pick_tq(S)
    nq = S // TQ
    dtype = x.dtype

    # Fused weights / bias: one [H, 3A] MXU weight push instead of three.
    wqkv = jnp.concatenate([wq, wk, wv], axis=1).astype(dtype)       # (H, 3A)
    bqkv = jnp.concatenate([bq, bk, bv]).reshape(1, 3 * A).astype(jnp.float32)

    # TODO(synk): for head dims < 128 (demo A=16), packing several heads per
    # call would make the out last dim lane-dense (multiple of 128).

    out, probs = pl.pallas_call(
        attention_head_kernel,
        out_shape=(
            jax.ShapeDtypeStruct((B, S, A), dtype),
            jax.ShapeDtypeStruct((B, S, S), jnp.float32),
        ),
        grid_spec=pltpu.PrefetchScalarGridSpec(
            num_scalar_prefetch=0,
            grid=(B, nq),
            in_specs=[
                # full sequence per batch element (resident across qi)
                pl.BlockSpec((None, S, H), lambda b, qi: (b, 0, 0)),
                pl.BlockSpec((H, 3 * A), lambda b, qi: (0, 0)),
                pl.BlockSpec((1, 3 * A), lambda b, qi: (0, 0)),
            ],
            out_specs=[
                pl.BlockSpec((None, TQ, A), lambda b, qi: (b, qi, 0)),
                pl.BlockSpec((None, TQ, S), lambda b, qi: (b, qi, 0)),
            ],
            scratch_shapes=[
                pltpu.VMEM((S, A), dtype),   # q
                pltpu.VMEM((S, A), dtype),   # k
                pltpu.VMEM((S, A), dtype),   # v
            ],
        ),
        compiler_params=pltpu.CompilerParams(
            # batch axis parallel (megacore), query-tile axis sequential so
            # the fused-QKV scratches carry across query tiles.
            dimension_semantics=("parallel", "arbitrary"),
            vmem_limit_bytes=64 * 1024 * 1024,
        ),
    )(x, wqkv, bqkv)
    return out, probs


def init_params(key, hidden_size, attention_head_size):
    """Deterministic init mimicking torch.nn.Linear default (uniform ±1/sqrt(fan_in))."""
    bound = 1.0 / math.sqrt(hidden_size)
    keys = jax.random.split(key, 6)
    shape_w = (hidden_size, attention_head_size)
    shape_b = (attention_head_size,)
    wq = jax.random.uniform(keys[0], shape_w, jnp.float32, -bound, bound)
    bq = jax.random.uniform(keys[1], shape_b, jnp.float32, -bound, bound)
    wk = jax.random.uniform(keys[2], shape_w, jnp.float32, -bound, bound)
    bk = jax.random.uniform(keys[3], shape_b, jnp.float32, -bound, bound)
    wv = jax.random.uniform(keys[4], shape_w, jnp.float32, -bound, bound)
    bv = jax.random.uniform(keys[5], shape_b, jnp.float32, -bound, bound)
    return wq, bq, wk, bk, wv, bv


if __name__ == "__main__":
    B, S, H, A = 2, 8, 32, 16   # batch, seq, hidden_size, attention_head_size

    key = jax.random.PRNGKey(0)
    kx, kp = jax.random.split(key)
    x = jax.random.normal(kx, (B, S, H), jnp.float32)
    wq, bq, wk, bk, wv, bv = init_params(kp, H, A)

    out, probs = relu_favor_attention_head(x, wq, bq, wk, bk, wv, bv)
    out = jax.block_until_ready(out)
    probs = jax.block_until_ready(probs)

    # pure-JAX reference (tolerance accounts for the approx EUP reciprocal)
    q = x @ wq + bq
    k = x @ wk + bk
    v = x @ wv + bv
    s = jnp.maximum(jnp.einsum('bqd,bkd->bqk', q, k), 0.0)
    p_ref = jax.nn.softmax(s, axis=-1)
    o_ref = jnp.einsum('bqk,bkd->bqd', p_ref, v)
    assert jnp.allclose(probs, p_ref, atol=5e-3), "probs mismatch"
    assert jnp.allclose(out, o_ref, atol=5e-3), "output mismatch"

    print("KERNEL_OK")
</pallas_src>

<mosaic_0001>
module attributes {stable_mosaic.version = 11 : i64} {
  func.func @attention_head_kernel(%arg0: i32, %arg1: i32, %arg2: memref<1x8x32xf32, #tpu.memory_space<vmem>>, %arg3: memref<32x48xf32, #tpu.memory_space<vmem>>, %arg4: memref<1x48xf32, #tpu.memory_space<vmem>>, %arg5: memref<1x8x16xf32, #tpu.memory_space<vmem>>, %arg6: memref<1x8x8xf32, #tpu.memory_space<vmem>>, %arg7: memref<8x16xf32, #tpu.memory_space<vmem>>, %arg8: memref<8x16xf32, #tpu.memory_space<vmem>>, %arg9: memref<8x16xf32, #tpu.memory_space<vmem>>) attributes {dimension_semantics = [#tpu.dimension_semantics<parallel>, #tpu.dimension_semantics<arbitrary>], iteration_bounds = array<i64: 2, 1>, scalar_prefetch = 0 : i64, scratch_operands = 3 : i64, tpu.core_type = #tpu.core_type<tc>, window_params = [{transform_indices = @transform_0, window_bounds = array<i64: 1, 8, 32>}, {pipeline_mode = #tpu.pipeline_mode<synchronous>, transform_indices = @transform_1, window_bounds = array<i64: 32, 48>}, {pipeline_mode = #tpu.pipeline_mode<synchronous>, transform_indices = @transform_2, window_bounds = array<i64: 1, 48>}, {transform_indices = @transform_3, window_bounds = array<i64: 1, 8, 16>}, {transform_indices = @transform_4, window_bounds = array<i64: 1, 8, 8>}]} {
    %c0_i32 = arith.constant 0 : i32
    %0 = arith.cmpi eq, %arg1, %c0_i32 : i32
    %1 = arith.extui %0 : i1 to i32
    %c0_i32_0 = arith.constant 0 : i32
    %2 = arith.cmpi ne, %1, %c0_i32_0 : i32
    scf.if %2 {
      %c0_15 = arith.constant 0 : index
      %c0_16 = arith.constant 0 : index
      %c0_17 = arith.constant 0 : index
      %29 = vector.load %arg2[%c0_15, %c0_16, %c0_17] : memref<1x8x32xf32, #tpu.memory_space<vmem>>, vector<1x8x32xf32>
      %30 = vector.shape_cast %29 : vector<1x8x32xf32> to vector<8x32xf32>
      %c0_18 = arith.constant 0 : index
      %c0_19 = arith.constant 0 : index
      %31 = vector.load %arg3[%c0_18, %c0_19] : memref<32x48xf32, #tpu.memory_space<vmem>>, vector<32x48xf32>
      %cst_20 = arith.constant dense<0.000000e+00> : vector<8x48xf32>
      %32 = tpu.matmul %30, %31, %cst_20 {dimension_numbers = #tpu.dot_dimension_numbers<[1], [0], [0], [1], [0, 0, 1, 1], [], []>} : vector<8x32xf32>, vector<32x48xf32>, vector<8x48xf32> -> vector<8x48xf32>
      %c0_21 = arith.constant 0 : index
      %c0_22 = arith.constant 0 : index
      %33 = vector.load %arg4[%c0_21, %c0_22] : memref<1x48xf32, #tpu.memory_space<vmem>>, vector<1x48xf32>
      %34 = vector.broadcast %33 : vector<1x48xf32> to vector<8x48xf32>
      %35 = arith.addf %32, %34 : vector<8x48xf32>
      %36 = vector.extract_strided_slice %35 {offsets = [0, 0], sizes = [8, 16], strides = [1, 1]} : vector<8x48xf32> to vector<8x16xf32>
      %c0_23 = arith.constant 0 : index
      %c0_24 = arith.constant 0 : index
      %37 = vector.load %arg7[%c0_23, %c0_24] : memref<8x16xf32, #tpu.memory_space<vmem>>, vector<8x16xf32>
      tpu.vector_store %arg7[%c0_23, %c0_24], %36 {strides = array<i32>} : memref<8x16xf32, #tpu.memory_space<vmem>>, vector<8x16xf32>,
      %38 = vector.extract_strided_slice %35 {offsets = [0, 16], sizes = [8, 16], strides = [1, 1]} : vector<8x48xf32> to vector<8x16xf32>
      %c0_25 = arith.constant 0 : index
      %c0_26 = arith.constant 0 : index
      %39 = vector.load %arg8[%c0_25, %c0_26] : memref<8x16xf32, #tpu.memory_space<vmem>>, vector<8x16xf32>
      tpu.vector_store %arg8[%c0_25, %c0_26], %38 {strides = array<i32>} : memref<8x16xf32, #tpu.memory_space<vmem>>, vector<8x16xf32>,
      %40 = vector.extract_strided_slice %35 {offsets = [0, 32], sizes = [8, 16], strides = [1, 1]} : vector<8x48xf32> to vector<8x16xf32>
      %c0_27 = arith.constant 0 : index
      %c0_28 = arith.constant 0 : index
      %41 = vector.load %arg9[%c0_27, %c0_28] : memref<8x16xf32, #tpu.memory_space<vmem>>, vector<8x16xf32>
      tpu.vector_store %arg9[%c0_27, %c0_28], %40 {strides = array<i32>} : memref<8x16xf32, #tpu.memory_space<vmem>>, vector<8x16xf32>,
    } else {
    }
    %c0 = arith.constant 0 : index
    %c0_1 = arith.constant 0 : index
    %3 = vector.load %arg8[%c0, %c0_1] : memref<8x16xf32, #tpu.memory_space<vmem>>, vector<8x16xf32>
    %c0_2 = arith.constant 0 : index
    %c0_3 = arith.constant 0 : index
    %4 = vector.load %arg9[%c0_2, %c0_3] : memref<8x16xf32, #tpu.memory_space<vmem>>, vector<8x16xf32>
    %c8_i32 = arith.constant 8 : i32
    %5 = arith.muli %arg1, %c8_i32 : i32
    %6 = tpu.assume_multiple %5, 8 : i32
    %7 = arith.index_cast %6 : i32 to index
    %c0_4 = arith.constant 0 : index
    %8 = vector.load %arg7[%7, %c0_4] : memref<8x16xf32, #tpu.memory_space<vmem>>, vector<8x16xf32>
    %cst = arith.constant dense<0.000000e+00> : vector<8x8xf32>
    %9 = tpu.matmul %8, %3, %cst {dimension_numbers = #tpu.dot_dimension_numbers<[1], [1], [0], [0], [0, 0, 1, 0], [], []>} : vector<8x16xf32>, vector<8x16xf32>, vector<8x8xf32> -> vector<8x8xf32>
    %cst_5 = arith.constant 0.000000e+00 : f32
    %10 = vector.broadcast %cst_5 : f32 to vector<8x8xf32>
    %11 = arith.maximumf %9, %10 : vector<8x8xf32>
    %cst_6 = arith.constant dense<0xFF800000> : vector<8xf32>
    %12 = vector.multi_reduction <maximumf>, %11, %cst_6 [1] : vector<8x8xf32> to vector<8xf32>
    %13 = vector.shape_cast %12 : vector<8xf32> to vector<8x1xf32>
    %14 = vector.broadcast %13 : vector<8x1xf32> to vector<8x8xf32>
    %15 = arith.subf %11, %14 : vector<8x8xf32>
    %16 = math.exp %15 : vector<8x8xf32>
    %cst_7 = arith.constant dense<0.000000e+00> : vector<8xf32>
    %17 = vector.multi_reduction <add>, %16, %cst_7 [1] : vector<8x8xf32> to vector<8xf32>
    %18 = vector.shape_cast %17 : vector<8xf32> to vector<8x1xf32>
    %19 = tpu.reciprocal %18 {approx = true} : vector<8x1xf32> -> vector<8x1xf32>
    %20 = vector.broadcast %19 : vector<8x1xf32> to vector<8x8xf32>
    %21 = arith.mulf %16, %20 : vector<8x8xf32>
    %cst_8 = arith.constant dense<0.000000e+00> : vector<8x16xf32>
    %22 = tpu.matmul %21, %4, %cst_8 {dimension_numbers = #tpu.dot_dimension_numbers<[1], [0], [0], [1], [0, 0, 1, 1], [], []>} : vector<8x8xf32>, vector<8x16xf32>, vector<8x16xf32> -> vector<8x16xf32>
    %c0_9 = arith.constant 0 : index
    %c0_10 = arith.constant 0 : index
    %c0_11 = arith.constant 0 : index
    %23 = vector.load %arg5[%c0_9, %c0_10, %c0_11] : memref<1x8x16xf32, #tpu.memory_space<vmem>>, vector<1x8x16xf32>
    %24 = vector.shape_cast %23 : vector<1x8x16xf32> to vector<8x16xf32>
    %25 = vector.shape_cast %22 : vector<8x16xf32> to vector<1x8x16xf32>
    tpu.vector_store %arg5[%c0_9, %c0_10, %c0_11], %25 {strides = array<i32>} : memref<1x8x16xf32, #tpu.memory_space<vmem>>, vector<1x8x16xf32>,
    %c0_12 = arith.constant 0 : index
    %c0_13 = arith.constant 0 : index
    %c0_14 = arith.constant 0 : index
    %26 = vector.load %arg6[%c0_12, %c0_13, %c0_14] : memref<1x8x8xf32, #tpu.memory_space<vmem>>, vector<1x8x8xf32>
    %27 = vector.shape_cast %26 : vector<1x8x8xf32> to vector<8x8xf32>
    %28 = vector.shape_cast %21 : vector<8x8xf32> to vector<1x8x8xf32>
    tpu.vector_store %arg6[%c0_12, %c0_13, %c0_14], %28 {strides = array<i32>} : memref<1x8x8xf32, #tpu.memory_space<vmem>>, vector<1x8x8xf32>,
    return
  }
  func.func @transform_0(%arg0: i32, %arg1: i32) -> (i32, i32, i32) {
    %c0_i32 = arith.constant 0 : i32
    %c0_i32_0 = arith.constant 0 : i32
    %c0_i32_1 = arith.constant 0 : i32
    return %arg0, %c0_i32, %c0_i32_0 : i32, i32, i32
  }
  func.func @transform_1(%arg0: i32, %arg1: i32) -> (i32, i32) {
    %c0_i32 = arith.constant 0 : i32
    %c0_i32_0 = arith.constant 0 : i32
    %c0_i32_1 = arith.constant 0 : i32
    return %c0_i32, %c0_i32_0 : i32, i32
  }
  func.func @transform_2(%arg0: i32, %arg1: i32) -> (i32, i32) {
    %c0_i32 = arith.constant 0 : i32
    %c0_i32_0 = arith.constant 0 : i32
    %c0_i32_1 = arith.constant 0 : i32
    return %c0_i32, %c0_i32_0 : i32, i32
  }
  func.func @transform_3(%arg0: i32, %arg1: i32) -> (i32, i32, i32) {
    %c0_i32 = arith.constant 0 : i32
    %c0_i32_0 = arith.constant 0 : i32
    return %arg0, %arg1, %c0_i32 : i32, i32, i32
  }
  func.func @transform_4(%arg0: i32, %arg1: i32) -> (i32, i32, i32) {
    %c0_i32 = arith.constant 0 : i32
    %c0_i32_0 = arith.constant 0 : i32
    return %arg0, %arg1, %c0_i32 : i32, i32, i32
  }
}

</mosaic_0001>

<bundles_post_ra>
// kernel: tpu_custom_call.1
= control target key start
LH: loop header
LB: loop body
LE: loop exit
PB: predicated region body
PF: predicated region fallthrough
CT: control target
= control target key end

     0   :  { %10 = vsyncpa [#allocation6], 0  ;;  %s1404_s0 = inlined_call_operand.hbm [shape: f32[2,8,32], index: 0, kind: input, shape index: {}]   ;;  %s1405_s1 = inlined_call_operand.hbm [shape: f32[32,48], index: 1, kind: input, shape index: {}]   ;;  %s1406_s2 = inlined_call_operand.hbm [shape: f32[1,48], index: 2, kind: input, shape index: {}]   ;;  %s1407_s3 = inlined_call_operand.hbm [shape: f32[2,8,16], index: 3, kind: output, shape index: {0}]   ;;  %s1408_s4 = inlined_call_operand.hbm [shape: f32[2,8,8], index: 4, kind: output, shape index: {1}]  }
   0x1   :  { %12 = vsyncpa [#allocation6 + $0x1], 0 }
   0x2   :  { %13 = vsyncpa [#allocation9], 0 }
   0x3   :  { %14 = vsyncpa [#allocation7], 0 }
   0x4   :  { %16 = vsyncpa [#allocation7 + $0x1], 0 }
   0x5   :  { %17 = vsyncpa [#allocation13], 0 }
   0x6   :  { %19 = vsyncpa [#allocation13 + $0x1], 0  ;;  %s1108_s15 = smov 0   ;;  %s1110_s16 = smov 0  }
   0x7   :  { %s1112_s17 = smov 0   ;;  %s1114_s18 = smov 0  }
   0x8   :  { %s1116_s19 = smov 0   ;;  %s1118_s20 = smov 0  }
   0x9 LB: > { %s705_s21 = sadd.s32 4294967295, %s1069_s20   ;;  %s706_s22 = sadd.s32 4294967294, %s1069_s20   ;;  %s1069_s20 = sphi %s1118_s20, %s25_s20   ;;  %s1065_s19 = sphi %s1116_s19, %s1430_s19   ;;  %s1061_s18 = sphi %s1114_s18, %s1429_s18   ;;  %s1057_s17 = sphi %s1112_s17, %s1428_s17   ;;  %s1053_s16 = sphi %s1110_s16, %s1427_s16   ;;  %s1049_s15 = sphi %s1108_s15, %s1426_s15  }
   0xa   : > { %p57_p0 = scmp.ne.s32.totalorder %s1053_s16, %s1049_s15  ;;  %p1142_p1 = scmp.eq.s32.totalorder %s705_s21, 0 }
   0xb   : > { %p1146_p2 = scmp.eq.s32.totalorder %s705_s21, 1  ;;  %p131_p3 = scmp.eq.s32.totalorder %s706_s22, 1 }
   0xc   : > { %s1413_s23 = scalar_select %p1142_p1, 1, 0 }
   0xd   : > { %p1152_p4 = por %p1142_p1, %p57_p0  ;;  %p707_p5 = scmp.ge.s32.totalorder %s1069_s20, 1 }
   0xe   : > { %p1157_p6 = por %p131_p3, %p57_p0  ;;  %p166_p7 = scmp.lt.s32.totalorder %s1069_s20, 3 }
   0xf   : > { %s1415_s25 = scalar_select %p1152_p4, 1, 0 }
  0x10   : > { %s1416_s26 = scalar_select %p1157_p6, 1, 0 }
  0x11   : > { %p1162_p8 = pnand %p707_p5, %p166_p7  ;;  %s1071_s28 = smov [#allocation8]  }
  0x12   : > { %s178_s29 = sshll.u32 %s1071_s28, 4  ;;  %s1072_s5 = smov [#allocation10]   ;;  %s1166_s29 = int_to_ptr.vmem [resolvable:$true] %s178_s29 }
  0x13   : > { %p780_p9 = pneg %p1162_p8  ;;  %s192_s6 = sshll.u32 %s1072_s5, 4  ;;  %s1177_s6 = int_to_ptr.vmem [resolvable:$true] %s192_s6 }
  0x14   : > { %s865_s9 = scalar_lea.hbm %s1405_s1, 512 }
  0x15   : > { %p1173_p11 = pnand %p780_p9, %p1142_p1  ;;  %p866_p12 = scmp.ne.s32.totalorder %s1405_s1, %s865_s9 }
  0x16   : > { %p872_p5 = scmp.lt.u32.totalorder %s865_s9, %s1405_s1 }
  0x17   : > { %p867_p13 = pneg %p1173_p11 }
  0x19   : > { %p868_p0 = pnand %p867_p13, %p866_p12 }
  0x1b   : > { %p869_p3 = pneg %p868_p0 }
  0x1d   : > { %p874_p7 = pnand %p872_p5, %p869_p3 }
  0x1f   : > { %877 = shalt.err (!%p874_p7)
}
  0x20   : > { %s878_s14 = scalar_lea.vmem %s1166_s29, 512  ;;  %p886_p1 = scmp.lt.s32.totalorder %s1166_s29, %s1166_s29 }
  0x21   : > { %p879_p9 = scmp.ne.s32.totalorder %s1166_s29, %s878_s14  ;;  %p887_p12 = scmp.lt.s32.totalorder %s878_s14, %s878_s14 }
  0x23   : > { %p881_p10 = pnand %p879_p9, %p867_p13  ;;  %p888_p0 = por %p887_p12, %p886_p1 }
  0x25   : > { %p882_p6 = pneg %p881_p10 }
  0x27   : > { %p889_p4 = pnand %p888_p0, %p882_p6 }
  0x29   : > { %892 = shalt.err (!%p889_p4)
}
  0x2a   : > { %s1073_s21 = smov 128   ;;  %s1074_s22 = smov 8  }
  0x2b   : > { %783 = dma.hbm_to_vmem [thread:$0]  (!%p1173_p11), %s1405_s1, 512, %s1166_s29, [#allocation9], %s1073_s21, %s1073_s21, %s1074_s22  }
  0x2c   : > { %s893_s9 = scalar_lea.hbm %s1406_s2, 16 }
  0x2d   : > { %p894_p1 = scmp.ne.s32.totalorder %s1406_s2, %s893_s9  ;;  %p900_p10 = scmp.lt.u32.totalorder %s893_s9, %s1406_s2 }
  0x2f   : > { %p896_p4 = pnand %p894_p1, %p867_p13 }
  0x31   : > { %p897_p6 = pneg %p896_p4 }
  0x33   : > { %p902_p3 = pnand %p900_p10, %p897_p6 }
  0x35   : > { %905 = shalt.err (!%p902_p3)
}
  0x36   : > { %s906_s29 = scalar_lea.vmem %s1177_s6, 16  ;;  %s913_s14 = scalar_lea.vmem %s1177_s6, 32 }
  0x37   : > { %p907_p5 = scmp.ne.s32.totalorder %s1177_s6, %s906_s29  ;;  %p914_p12 = scmp.lt.s32.totalorder %s1177_s6, %s1177_s6 }
  0x38   : > { %p915_p0 = scmp.lt.s32.totalorder %s913_s14, %s906_s29 }
  0x39   : > { %p909_p7 = pnand %p907_p5, %p867_p13 }
  0x3a   : > { %p916_p1 = por %p915_p0, %p914_p12 }
  0x3b   : > { %p910_p9 = pneg %p909_p7 }
  0x3d   : > { %p917_p4 = pnand %p916_p1, %p910_p9 }
  0x3f   : > { %920 = shalt.err (!%p917_p4)
}
  0x40   : > { %786 = dma.hbm_to_vmem [thread:$0]  (!%p1173_p11), %s1406_s2, 16, %s1177_s6, [#allocation9]  }
  0x41   : > { %s37_s28 = sadd.s32 1, %s1065_s19  ;;  %s44_s5 = sadd.s32 1, %s1057_s17 }
  0x42   : > { %p39_p13 = scmp.ge.s32.totalorder %s37_s28, 2  ;;  %p51_p6 = scmp.ne.s32.totalorder %s1057_s17, %s1053_s16 }
  0x43   : > { %p52_p10 = scmp.eq.s32.totalorder %s1069_s20, 0  ;;  %p800_p3 = scmp.lt.s32.totalorder %s1069_s20, 2 }
  0x44   : > { %s1432_s28 = smov (%p39_p13, %s37_s28), 0  ;;  %p1242_p7 = por %p1146_p2, %p51_p6 }
  0x45   : > { %p53_p5 = por %p52_p10, %p51_p6  ;;  %s41_s7 = ssub.s32 %s1065_s19, %s1432_s28 }
  0x46   : > { %s1419_s30 = scalar_select %p1242_p7, 1, 0 }
  0x47   : > { %s203_s8 = sand.u32 1, %s1057_s17   ;;  %p42_p9 = scmp.eq.s32.totalorder %s41_s7, 0 }
  0x48   : > { %s711_s6 = sshll.u32 %s203_s8, 3  ;;  %s712_s9 = sshll.u32 %s1065_s19, 7 }
  0x49   : > { %s1251_s10 = scalar_select %p42_p9, %s1057_s17, %s44_s5  }
  0x4a   : > { %s1256_s13 = scalar_lea.hbm %s1404_s0, %s712_s9  ;;  %s207_s24 = scalar_lea.vmem [#allocation5], %s711_s6 }
  0x4b   : > { %s214_s29 = sshll.u32 %s207_s24, 4  ;;  %p1260_p2 = pnand %p800_p3, %p53_p5  ;;  %s1264_s29 = int_to_ptr.vmem [resolvable:$true] %s214_s29 }
  0x4c   : > { %s204_s21 = scalar_lea.sflag [#allocation6], %s203_s8  ;;  %s921_s22 = scalar_lea.hbm %s1256_s13, 128 }
  0x4d   : > { %p922_p11 = scmp.ne.s32.totalorder %s1256_s13, %s921_s22  ;;  %p923_p12 = pneg %p1260_p2 }
  0x4e   : > { %s926_s6 = scalar_lea.hbm %s1404_s0, 256  ;;  %p927_p4 = scmp.lt.u32.totalorder %s1256_s13, %s1404_s0 }
  0x4f   : > { %p924_p0 = pnand %p923_p12, %p922_p11  ;;  %p928_p13 = scmp.lt.u32.totalorder %s926_s6, %s921_s22 }
  0x50   : > { %p930_p10 = scmp.lt.u32.totalorder %s921_s22, %s1256_s13 }
  0x51   : > { %p925_p1 = pneg %p924_p0  ;;  %p929_p6 = por %p928_p13, %p927_p4 }
  0x53   : > { %p931_p3 = por %p930_p10, %p929_p6 }
  0x55   : > { %p932_p5 = pnand %p931_p3, %p925_p1 }
  0x57   : > { %935 = shalt.err (!%p932_p5)
}
  0x58   : > { %s936_s8 = scalar_lea.vmem %s1264_s29, 128  ;;  %s1075_s12 = smov [#allocation5]  }
  0x59   : > { %p937_p9 = scmp.ne.s32.totalorder %s1264_s29, %s936_s8  ;;  %s941_s24 = sshll.u32 %s1075_s12, 4  ;;  %s942_s24 = int_to_ptr.vmem [resolvable:$false] %s941_s24 }
  0x5a   : > { %s943_s5 = scalar_lea.vmem %s942_s24, 256  ;;  %p944_p7 = scmp.lt.s32.totalorder %s1264_s29, %s942_s24 }
  0x5b   : > { %p939_p11 = pnand %p937_p9, %p923_p12  ;;  %p945_p4 = scmp.lt.s32.totalorder %s943_s5, %s936_s8 }
  0x5d   : > { %p940_p0 = pneg %p939_p11  ;;  %p946_p13 = por %p945_p4, %p944_p7 }
  0x5f   : > { %p947_p6 = pnand %p946_p13, %p940_p0 }
  0x61   : > { %950 = shalt.err (!%p947_p6)
}
  0x62   : > { %790 = dma.hbm_to_vmem [thread:$0]  (!%p1260_p2), %s1256_s13, 128, %s1264_s29, %s204_s21  }
  0x63   : > { %223 = sbr.rel (%p1162_p8) target bundleno = 1215 (0x4bf), region = 32  ;;  %s1294_s22 = sand.u32 (!%p1162_p8), 1, %s1053_s16  }
  0x64   : > { %s1297_s7 = sshll.u32 (!%p1162_p8), %s1294_s22, 3  ;;  %s226_s6 = scalar_lea.sflag (!%p1162_p8), [#allocation6], %s1294_s22 }
  0x65   : > { %s229_s9 = scalar_lea.vmem (!%p1162_p8), [#allocation5], %s1297_s7  ;;  %p1421_p7 = scmp.ne.s32.totalorder (!%p1162_p8), %s1415_s25, 0 }
  0x6a   : > { %1032 = dma.done.wait (%p1421_p7), %s226_s6, 128  }
  0x6b   : > { %1034 = vsyncadd (%p1421_p7), %s226_s6, 4294967168  ;;  %p1422_p2 = scmp.ne.s32.totalorder %s1413_s23, 0 }
  0x6d   : > { %1036 = dma.done.wait (%p1422_p2), [#allocation9], 528  }
  0x6e   : > { %1038 = vsyncadd (%p1422_p2), [#allocation9], 4294966768  ;;  %v1076_v0 = vmov 0.0|0.0   ;;  %vm1077_vm0 = vmmov 0   ;;  %v1078_v1 = vmov 0.0   ;;  %v272_v2 = vld [vmem:[#allocation8] sm:$0xff] }
  0x6f   : > { %760 = vmatprep.subr.bf16.mxu0 %v1076_v0  ;;  %747 = vmatprep.mubr.msk.f32.mxu0 %vm1077_vm0, %v1078_v1  ;;  %v273_v3 = vld [vmem:[#allocation8 + $0x8] sm:$0xff]  ;;  %v274_v4 = vld [vmem:[#allocation8 + $0x10] sm:$0xff]  ;;  %v275_v6 = vld [vmem:[#allocation8 + $0x18] sm:$0xff]  ;;  %vm283_vm1 = vcmask 261120   ;;  %vm357_vm2 = vcmask 130048   ;;  %s1079_s23 = smov 112  }
  0x70   : > { %750 = vmatprep.subr.mxu1 %v1078_v1  ;;  %752 = vmatprep.mubr.msk.f32.mxu1 %vm1077_vm0, %v1078_v1  ;;  %v761_v5 = vpack.c.bf16 %v273_v3, %v272_v2  ;;  %v764_v7 = vpack.c.bf16 %v275_v6, %v274_v4  ;;  %v271_v8 = vld [vmem:[%s229_s9] sm:$0xff]  ;;  %v719_v9 = vld [vmem:[#allocation10] ss:$0 sm:$0xff]  ;;  %vm451_vm3 = vcmask 64512   ;;  %s1080_s25 = smov 96   ;;  %s266_s27 = scalar_lea.vmem [#allocation12], %s1297_s7 }
  0x71   : > { %s726_s13 = sshll.u32 %s1061_s18, 7  ;;  %s572_s11 = sshll.u32 %s266_s27, 4  ;;  %s573_s11 = int_to_ptr.vmem [resolvable:$true] %s572_s11 }
  0x72   : > { %762 = vmatpush3.bf16.msra.mxu0 %v761_v5  ;;  %s1328_s21 = scalar_lea.hbm %s1408_s4, %s726_s13  ;;  %s544_s8 = scalar_lea.sflag [#allocation13], %s1294_s22 }
  0x73   : > { %763 = vmatprep.subr.bf16.mxu0 %v1076_v0  ;;  %s951_s12 = scalar_lea.vmem %s573_s11, 128  ;;  %p1423_p12 = scmp.ne.s32.totalorder %s1419_s30, 0 }
  0x74   : > { %p952_p8 = scmp.ne.s32.totalorder %s573_s11, %s951_s12  ;;  %s1081_s24 = smov [#allocation12]  }
  0x75   : > { %s955_s5 = sshll.u32 %s1081_s24, 4  ;;  %s956_s5 = int_to_ptr.vmem [resolvable:$false] %s955_s5 }
  0x76   : > { %765 = vmatpush3.bf16.msra.mxu0 %v764_v7  ;;  %p953_p1 = pnand %p952_p8, %p1423_p12  ;;  %s957_s6 = scalar_lea.vmem %s956_s5, 256 }
  0x77   : > { %p958_p3 = scmp.lt.s32.totalorder %s573_s11, %s956_s5  ;;  %p959_p5 = scmp.lt.s32.totalorder %s957_s6, %s951_s12 }
  0x78   : > { %p954_p10 = pneg %p953_p1 }
  0x79   : > { %748 = vmatmul.mubr.msk.f32.vlgmr.msra.gmra.mrb[0].mxu0 %vm283_vm1, %v271_v8  ;;  %p960_p9 = por %p959_p5, %p958_p3 }
  0x7b   : > { %p961_p11 = pnand %p960_p9, %p954_p10 }
 0x14c   : > { %v353_v10 = vpop.f32.mrb[0].mxu0 }
 0x14d   : > { %v354_v11 = vadd.f32 %v719_v9, %v353_v10  ;;  %v749_v12 = vpop.f32.mrb[1].mxu0 }
 0x14f   : > { %358 = vst.msk [vmem:[#allocation2] sm:$0xff] %vm357_vm2, %v354_v11  ;;  %360 = vrot.lane.b32.xlu0 %v354_v11, %s1079_s23 }
 0x156   : > { %v372_v15 = vld [vmem:[#allocation2] sm:$0xff] }
 0x1c1   : > { %v361_v13 = vpop.permute.xlu0 %360 }
 0x1c2   : > { %363 = vst.msk [vmem:[#allocation3] sm:$0xff] %vm357_vm2, %v361_v13 }
 0x1c9   : > { %v368_v14 = vld [vmem:[#allocation3] sm:$0xff] }
 0x1ca   : > { %751 = vmatpush3.xpose.msk.msra.mxu1 %vm357_vm2, %v368_v14 }
 0x1cb   : > { %755 = vmatprep.subr.mxu1 %v1078_v1 }
 0x1cd   : > { %753 = vmatmul.mubr.msk.f32.vlgmr.msra.gmra.mrb[0].mxu1 %vm357_vm2, %v372_v15 }
 0x1ce   : > { %757 = vmatprep.mubr.msk.f32.mxu1 %vm1077_vm0, %v1078_v1 }
 0x2a0   : > { %v446_v16 = vpop.f32.mrb[0].mxu1 }
 0x2a1   : > { %v450_v17 = vmax.f32 %v446_v16, 0.0  ;;  %v754_v18 = vpop.f32.mrb[1].mxu1 }
 0x2a3   : > { %v452_v19 = vsel %vm451_vm3, %v450_v17, -inf }
 0x2a4   : > { %453 = vmax.xlane.f32.xlu0 %v452_v19 }
 0x331   : > { %v454_v20 = vpop.xlane.xlu0 %453 }
 0x332   : > { %v455_v21 = vsub.f32 %v450_v17, %v454_v20 }
 0x334   : > { %v456_v22 = vmul.f32 1.442695, %v455_v21 }
 0x336   : > { %861 = vpow2.f32 %v456_v22 }
 0x340   : > { %v862_v23 = vpop.eup %861 }
 0x341   : > { %v458_v24 = vsel %vm451_vm3, %v862_v23, 0.0 }
 0x342   : > { %459 = vadd.xlane.f32.xlu1 %v458_v24 }
 0x353   : > { %364 = vrot.lane.b32.xlu1 %v354_v11, %s1080_s25 }
 0x3cf   : > { %v460_v25 = vpop.xlane.xlu1 %459 }
 0x3d0   : > { %863 = vrcp.f32 %v460_v25 }
 0x3d3   : > { %v365_v26 = vpop.permute.xlu1 %364 }
 0x3d4   : > { %367 = vst.msk [vmem:[#allocation4] sm:$0xff] %vm357_vm2, %v365_v26 }
 0x3da   : > { %v864_v27 = vpop.eup %863 }
 0x3db   : > { %v462_v28 = vmul.f32 %v864_v27, %v862_v23  ;;  %v369_v29 = vld [vmem:[#allocation4] sm:$0xff] }
 0x3dc   : > { %756 = vmatpush3.msra.mxu1 %v369_v29 }
 0x3dd   : > { %758 = vmatmul.mubr.msk.f32.vlgmr.msra.gmra.mrb[2].mxu1 %vm451_vm3, %v462_v28  ;;  %537 = vst.msk [vmem:[%s266_s27] sm:$0xff] %vm451_vm3, %v462_v28 }
 0x3de   : > { %964 = shalt.err (!%p961_p11)
}
 0x3df   : > { %s965_s9 = scalar_lea.hbm %s1328_s21, 128  ;;  %s969_s27 = scalar_lea.hbm %s1408_s4, 256 }
 0x3e0   : > { %p966_p0 = scmp.ne.s32.totalorder %s1328_s21, %s965_s9  ;;  %p970_p6 = scmp.lt.u32.totalorder %s1328_s21, %s1408_s4 }
 0x3e1   : > { %p971_p7 = scmp.lt.u32.totalorder %s969_s27, %s965_s9  ;;  %p973_p8 = scmp.lt.u32.totalorder %s965_s9, %s1328_s21 }
 0x3e2   : > { %p967_p4 = pnand %p966_p0, %p1423_p12 }
 0x3e3   : > { %p972_p2 = por %p971_p7, %p970_p6 }
 0x3e4   : > { %p968_p13 = pneg %p967_p4 }
 0x3e5   : > { %p974_p1 = por %p973_p8, %p972_p2 }
 0x3e7   : > { %p975_p10 = pnand %p974_p1, %p968_p13 }
 0x3e9   : > { %978 = shalt.err (!%p975_p10)
}
 0x3ea   : > { %777 = dma.vmem_to_hbm [thread:$0]  (%p1423_p12), %s573_s11, 128, %s1328_s21, %s544_s8  }
 0x3eb   : > { %s259_s12 = scalar_lea.vmem [#allocation11], %s1297_s7  ;;  %s1354_s23 = scalar_lea.hbm %s1407_s3, %s726_s13 }
 0x3ec   : > { %s558_s24 = sshll.u32 %s259_s12, 4  ;;  %s539_s9 = scalar_lea.sflag [#allocation7], %s1294_s22  ;;  %s1356_s24 = int_to_ptr.vmem [resolvable:$true] %s558_s24 }
 0x3ed   : > { %s979_s25 = scalar_lea.vmem %s1356_s24, 128  ;;  %s1082_s18 = smov [#allocation11]  }
 0x3ee   : > { %p980_p3 = scmp.ne.s32.totalorder %s1356_s24, %s979_s25  ;;  %s983_s7 = sshll.u32 %s1082_s18, 4  ;;  %s984_s7 = int_to_ptr.vmem [resolvable:$false] %s983_s7 }
 0x3ef   : > { %s985_s13 = scalar_lea.vmem %s984_s7, 256  ;;  %p986_p11 = scmp.lt.s32.totalorder %s1356_s24, %s984_s7 }
 0x3f0   : > { %p981_p5 = pnand %p980_p3, %p1423_p12  ;;  %p987_p0 = scmp.lt.s32.totalorder %s985_s13, %s979_s25 }
 0x3f2   : > { %p982_p9 = pneg %p981_p5  ;;  %p988_p4 = por %p987_p0, %p986_p11 }
 0x3f4   : > { %p989_p13 = pnand %p988_p4, %p982_p9 }
 0x4b0   : > { %v532_v30 = vpop.f32.mrb[2].mxu1 }
 0x4b1   : > { %536 = vst.msk [vmem:[%s259_s12] sm:$0xff] %vm357_vm2, %v532_v30  ;;  %v759_v31 = vpop.f32.mrb[3].mxu1 }
 0x4b2   : > { %992 = shalt.err (!%p989_p13)
}
 0x4b3   : > { %s993_s22 = scalar_lea.hbm %s1354_s23, 128  ;;  %s997_s8 = scalar_lea.hbm %s1407_s3, 256 }
 0x4b4   : > { %p994_p6 = scmp.ne.s32.totalorder %s1354_s23, %s993_s22  ;;  %p998_p8 = scmp.lt.u32.totalorder %s1354_s23, %s1407_s3 }
 0x4b5   : > { %p999_p1 = scmp.lt.u32.totalorder %s997_s8, %s993_s22  ;;  %p1001_p3 = scmp.lt.u32.totalorder %s993_s22, %s1354_s23 }
 0x4b6   : > { %p995_p7 = pnand %p994_p6, %p1423_p12 }
 0x4b7   : > { %p1000_p10 = por %p999_p1, %p998_p8 }
 0x4b8   : > { %p996_p2 = pneg %p995_p7 }
 0x4b9   : > { %p1002_p5 = por %p1001_p3, %p1000_p10 }
 0x4bb   : > { %p1003_p9 = pnand %p1002_p5, %p996_p2 }
 0x4bd   : > { %1006 = shalt.err (!%p1003_p9)
}
 0x4be   : > { %776 = dma.vmem_to_hbm [thread:$0]  (%p1423_p12), %s1356_s24, 128, %s1354_s23, %s539_s9  }
 0x4bf PF: > { %s584_s14 = sand.u32 1, %s1049_s15   ;;  %p1424_p11 = scmp.ne.s32.totalorder %s1416_s26, 0 }
 0x4c0   : > { %p1425_p0 = scmp.ge.s32.totalorder %s1069_s20, 2  ;;  %s585_s12 = scalar_lea.sflag [#allocation7], %s584_s14 }
 0x4c2   : > { %p792_p4 = pnand %p1425_p0, %p1424_p11 }
 0x4c4   : > { %1040 = dma.done.wait (!%p792_p4), %s585_s12, 128  }
 0x4c5   : > { %1042 = vsyncadd (!%p792_p4), %s585_s12, 4294967168  ;;  %s594_s5 = scalar_lea.sflag [#allocation13], %s584_s14 }
 0x4c6   : > { %1044 = dma.done.wait (!%p792_p4), %s594_s5, 128  }
 0x4c7   : > { %1046 = vsyncadd (!%p792_p4), %s594_s5, 4294967168  ;;  %s25_s20 = sadd.s32 1, %s1069_s20   ;;  %s1426_s15 = smov %s1053_s16 }
 0x4c8   : > { %p22_p13 = scmp.ge.s32.totalorder %s25_s20, 4   ;;  %s1427_s16 = smov %s1057_s17 }
 0x4c9   : > { %s1428_s17 = smov %s1251_s10  ;;  %s1429_s18 = smov %s1065_s19 }
 0x4ca   : > { %s1430_s19 = smov %s1432_s28  ;;  %24 = sbr.rel (!%p22_p13) target bundleno = 9 (0x9), region = 107 }
 0x4d1   :  { %599 = vsyncpa [#allocation6], 1 }
 0x4d2   :  { %601 = vsyncpa [#allocation6 + $0x1], 1 }
 0x4d3   :  { %602 = vsyncpa [#allocation9], 1 }
 0x4d4   :  { %603 = vsyncpa [#allocation7], 1 }
 0x4d5   :  { %605 = vsyncpa [#allocation7 + $0x1], 1 }
 0x4d6   :  { %606 = vsyncpa [#allocation13], 1 }
 0x4d7   :  { %608 = vsyncpa [#allocation13 + $0x1], 1 }

</bundles_post_ra>
